<compile_context>
chip_gen: v7x
topology: tpu7x:2x2x1
jax: 0.10.0
libtpu: 0.0.40
codegen_flags: <defaults>
</compile_context>

<pallas_src>
import math

import jax
import jax.numpy as jnp
from jax import lax
from jax.experimental import pallas as pl
from jax.experimental.pallas import tpu as pltpu


def _round_up(x, m):
    return ((x + m - 1) // m) * m


def _round_down(x, m):
    return (x // m) * m


def _linear_kernel(x_ref, w_ref, b_ref, o_ref, acc_ref):
    # x_ref: (TM, TK)   w_ref: (TN, TK)  (torch Linear layout, NOT transposed)
    # b_ref: (1, TN)    o_ref: (TM, TN)  acc_ref: (TM, TN) f32 scratch
    k = pl.program_id(2)

    @pl.when(k == 0)
    def _():
        acc_ref[...] = jnp.zeros_like(acc_ref)

    # x @ W.T on the MXU: contract the K (last) dim of both operands.
    acc_ref[...] += lax.dot_general(
        x_ref[...], w_ref[...],
        dimension_numbers=(((1,), (1,)), ((), ())),
        preferred_element_type=jnp.float32)

    @pl.when(k == pl.num_programs(2) - 1)
    def _():
        o_ref[...] = (acc_ref[...]
                      + b_ref[...].astype(jnp.float32)).astype(o_ref.dtype)


def matrix_apply(x, weight, bias, *, tm=None, tn=None, tk=None,
                 vmem_budget_bytes=48 * 1024 * 1024):
    """Pallas implementation of MatrixApply(nn.Linear).

    x:      [B, N, S, D_in]
    weight: [D_out, D_in]   (PyTorch Linear layout; not transposed here)
    bias:   [D_out]
    returns [B, N, S, D_out]
    """
    B, N, S, D_in = x.shape
    D_out, D_in_w = weight.shape
    assert D_in_w == D_in, (weight.shape, D_in)
    M = B * N * S

    x2d = x.reshape(M, D_in)        # contiguous reshape: no data movement
    b2d = bias.reshape(1, D_out)
    out_dtype = x.dtype

    itemsize = jnp.dtype(x.dtype).itemsize
    out_itemsize = jnp.dtype(out_dtype).itemsize
    b_itemsize = jnp.dtype(bias.dtype).itemsize
    sub = max(8, 32 // itemsize)    # sublane multiple: 8 f32 / 16 bf16 / 32 i8

    # ---- tile selection -----------------------------------------------------
    # M tile: big (512) to fill the MXU & amortize per-step overhead, aligned
    # to the dtype sublane multiple, never larger than (rounded-up) M.
    tm = 512 if tm is None else tm
    tm = max(sub, min(_round_up(tm, sub), _round_up(M, sub)))

    # D_out tile: full D_out when small, else a 128-lane multiple.
    tn = 512 if tn is None else tn
    if tn >= D_out:
        tn = D_out
    else:
        tn = max(128, _round_down(tn, 128))

    # D_in (reduction) tile: only tileable when 128-aligned, else keep whole.
    can_tile_k = (D_in % 128 == 0)
    tk = D_in if tk is None else tk
    if not can_tile_k or tk >= D_in:
        tk = D_in
    else:
        tk = max(128, _round_down(tk, 128))

    def vmem_need(tm_, tn_, tk_, w_bufs):
        x_b = 2 * tm_ * tk_ * itemsize            # double-buffered activations
        w_b = w_bufs * tn_ * tk_ * itemsize       # weight tile(s)
        bb = w_bufs * tn_ * b_itemsize            # bias tile(s)
        o_b = 2 * tm_ * tn_ * out_itemsize        # double-buffered output
        acc = tm_ * tn_ * 4                       # f32 accumulator scratch
        return x_b + w_b + bb + o_b + acc

    # Shrink K first (just more accumulation steps), then M, then N, until the
    # working set fits the budget (48 MiB default: safe on v7x's 64 MiB VMEM,
    # well within v5e/v6e's 128 MiB with vmem_limit_bytes raised below).
    while (vmem_need(tm, tn, tk, 2) > vmem_budget_bytes
           and can_tile_k and tk > 128):
        tk = max(128, _round_down(tk // 2, 128))
    while vmem_need(tm, tn, tk, 2) > vmem_budget_bytes and tm > sub:
        tm = max(sub, _round_up(tm // 2, sub))
    while (vmem_need(tm, tn, tk, 2) > vmem_budget_bytes
           and tn != D_out and tn > 128):
        tn = max(128, _round_down(tn // 2, 128))

    grid = (pl.cdiv(M, tm), pl.cdiv(D_out, tn), pl.cdiv(D_in, tk))
    num_j, num_k = grid[1], grid[2]

    # Weight/bias block index is grid-constant when there is a single
    # (D_out, D_in) tile -> single-buffer it so a resident weight doesn't
    # pay 2x VMEM (matters most on v7x's 64 MiB).
    weight_is_resident = (num_j == 1 and num_k == 1)
    w_bufs = 1 if weight_is_resident else 2

    vmem_limit = int(min(max(vmem_need(tm, tn, tk, w_bufs) + (8 << 20),
                             32 << 20),
                         96 << 20))

    cost = pl.CostEstimate(
        flops=2 * M * D_in * D_out,
        transcendentals=0,
        bytes_accessed=((M * D_in + D_out * D_in) * itemsize
                        + D_out * b_itemsize
                        + M * D_out * out_itemsize))

    def _build(wb_pipeline_mode):
        wb_kwargs = ({} if wb_pipeline_mode is None
                     else dict(pipeline_mode=wb_pipeline_mode))
        grid_spec = pltpu.PrefetchScalarGridSpec(
            num_scalar_prefetch=0,
            grid=grid,
            in_specs=[
                pl.BlockSpec((tm, tk), lambda i, j, k: (i, k)),
                pl.BlockSpec((tn, tk), lambda i, j, k: (j, k), **wb_kwargs),
                pl.BlockSpec((1, tn), lambda i, j, k: (0, j), **wb_kwargs),
            ],
            out_specs=pl.BlockSpec((tm, tn), lambda i, j, k: (i, j)),
            scratch_shapes=[pltpu.VMEM((tm, tn), jnp.float32)],
        )
        return pl.pallas_call(
            _linear_kernel,
            out_shape=jax.ShapeDtypeStruct((M, D_out), out_dtype),
            grid_spec=grid_spec,
            compiler_params=pltpu.CompilerParams(
                dimension_semantics=("parallel", "parallel", "arbitrary"),
                vmem_limit_bytes=vmem_limit),
            cost_estimate=cost,
        )

    if weight_is_resident:
        try:
            out2d = _build(pl.Buffered(1))(x2d, weight, b2d)
        except Exception:
            # pipeline_mode / Buffered(1) not supported on this jax build:
            # fall back to default double-buffering (identical results).
            out2d = _build(None)(x2d, weight, b2d)
    else:
        out2d = _build(None)(x2d, weight, b2d)

    return out2d.reshape(B, N, S, D_out)


def _reference(x, weight, bias):
    B, N, S, D_in = x.shape
    D_out = weight.shape[0]
    out = lax.dot_general(
        x.reshape(-1, D_in), weight,
        dimension_numbers=(((1,), (1,)), ((), ())),
        precision=lax.Precision.HIGHEST,
        preferred_element_type=jnp.float32) + bias.astype(jnp.float32)
    return out.astype(x.dtype).reshape(B, N, S, D_out)


if __name__ == "__main__":
    key = jax.random.PRNGKey(0)

    def run_case(case_id, B, N, S, D_in, D_out, **tiles):
        kx, kw, kb = jax.random.split(jax.random.fold_in(key, case_id), 3)
        x = jax.random.normal(kx, (B, N, S, D_in), dtype=jnp.float32)
        # PyTorch nn.Linear default init range: U(-1/sqrt(D_in), 1/sqrt(D_in)).
        bound = 1.0 / math.sqrt(D_in)
        weight = jax.random.uniform(kw, (D_out, D_in), minval=-bound,
                                    maxval=bound, dtype=jnp.float32)
        bias = jax.random.uniform(kb, (D_out,), minval=-bound, maxval=bound,
                                  dtype=jnp.float32)

        out = jax.block_until_ready(matrix_apply(x, weight, bias, **tiles))
        ref = _reference(x, weight, bias)
        assert out.shape == (B, N, S, D_out), out.shape
        err = float(jnp.max(jnp.abs(out - ref)))
        assert err < 1e-4, f"case {case_id}: max abs err {err}"

    # Small shapes consistent with the module's forward (flatten first 3 dims,
    # last dim is the Linear input dim).
    run_case(0, B=2, N=4, S=16, D_in=32, D_out=64)
    # Ragged token count (M=60, not a multiple of the 32-row tile): exercises
    # the masked boundary tile instead of a host-side pad + slice.
    run_case(1, B=2, N=3, S=10, D_in=32, D_out=48, tm=32)

    print("KERNEL_OK")
</pallas_src>

<mosaic_0001>
module attributes {stable_mosaic.version = 11 : i64} {
  func.func @_linear_kernel(%arg0: i32, %arg1: i32, %arg2: i32, %arg3: memref<128x32xf32, #tpu.memory_space<vmem>>, %arg4: memref<64x32xf32, #tpu.memory_space<vmem>>, %arg5: memref<1x64xf32, #tpu.memory_space<vmem>>, %arg6: memref<128x64xf32, #tpu.memory_space<vmem>>, %arg7: memref<128x64xf32, #tpu.memory_space<vmem>>) attributes {dimension_semantics = [#tpu.dimension_semantics<parallel>, #tpu.dimension_semantics<parallel>, #tpu.dimension_semantics<arbitrary>], iteration_bounds = array<i64: 1, 1, 1>, scalar_prefetch = 0 : i64, scratch_operands = 1 : i64, tpu.core_type = #tpu.core_type<tc>, window_params = [{transform_indices = @transform_0, window_bounds = array<i64: 128, 32>}, {pipeline_mode = #tpu.pipeline_mode<synchronous>, transform_indices = @transform_1, window_bounds = array<i64: 64, 32>}, {pipeline_mode = #tpu.pipeline_mode<synchronous>, transform_indices = @transform_2, window_bounds = array<i64: 1, 64>}, {transform_indices = @transform_3, window_bounds = array<i64: 128, 64>}]} {
    %c0_i32 = arith.constant 0 : i32
    %0 = arith.cmpi eq, %arg2, %c0_i32 : i32
    %1 = arith.extui %0 : i1 to i32
    %c0_i32_0 = arith.constant 0 : i32
    %2 = arith.cmpi ne, %1, %c0_i32_0 : i32
    scf.if %2 {
      %cst_10 = arith.constant 0.000000e+00 : f32
      %12 = vector.broadcast %cst_10 : f32 to vector<128x64xf32>
      %c0_11 = arith.constant 0 : index
      %c0_12 = arith.constant 0 : index
      %13 = vector.load %arg7[%c0_11, %c0_12] : memref<128x64xf32, #tpu.memory_space<vmem>>, vector<128x64xf32>
      tpu.vector_store %arg7[%c0_11, %c0_12], %12 {strides = array<i32>} : memref<128x64xf32, #tpu.memory_space<vmem>>, vector<128x64xf32>,
    } else {
    }
    %c0 = arith.constant 0 : index
    %c0_1 = arith.constant 0 : index
    %3 = vector.load %arg7[%c0, %c0_1] : memref<128x64xf32, #tpu.memory_space<vmem>>, vector<128x64xf32>
    %c0_2 = arith.constant 0 : index
    %c0_3 = arith.constant 0 : index
    %4 = vector.load %arg3[%c0_2, %c0_3] : memref<128x32xf32, #tpu.memory_space<vmem>>, vector<128x32xf32>
    %c0_4 = arith.constant 0 : index
    %c0_5 = arith.constant 0 : index
    %5 = vector.load %arg4[%c0_4, %c0_5] : memref<64x32xf32, #tpu.memory_space<vmem>>, vector<64x32xf32>
    %cst = arith.constant dense<0.000000e+00> : vector<128x64xf32>
    %6 = tpu.matmul %4, %5, %cst {dimension_numbers = #tpu.dot_dimension_numbers<[1], [1], [0], [0], [0, 0, 1, 0], [], []>} : vector<128x32xf32>, vector<64x32xf32>, vector<128x64xf32> -> vector<128x64xf32>
    %7 = arith.addf %3, %6 : vector<128x64xf32>
    %c0_6 = arith.constant 0 : index
    %c0_7 = arith.constant 0 : index
    %8 = vector.load %arg7[%c0_6, %c0_7] : memref<128x64xf32, #tpu.memory_space<vmem>>, vector<128x64xf32>
    tpu.vector_store %arg7[%c0_6, %c0_7], %7 {strides = array<i32>} : memref<128x64xf32, #tpu.memory_space<vmem>>, vector<128x64xf32>,
    %c0_i32_8 = arith.constant 0 : i32
    %9 = arith.cmpi eq, %arg2, %c0_i32_8 : i32
    %10 = arith.extui %9 : i1 to i32
    %c0_i32_9 = arith.constant 0 : i32
    %11 = arith.cmpi ne, %10, %c0_i32_9 : i32
    scf.if %11 {
      %c0_10 = arith.constant 0 : index
      %c0_11 = arith.constant 0 : index
      %12 = vector.load %arg7[%c0_10, %c0_11] : memref<128x64xf32, #tpu.memory_space<vmem>>, vector<128x64xf32>
      %c0_12 = arith.constant 0 : index
      %c0_13 = arith.constant 0 : index
      %13 = vector.load %arg5[%c0_12, %c0_13] : memref<1x64xf32, #tpu.memory_space<vmem>>, vector<1x64xf32>
      %14 = vector.broadcast %13 : vector<1x64xf32> to vector<128x64xf32>
      %15 = arith.addf %12, %14 : vector<128x64xf32>
      %c0_14 = arith.constant 0 : index
      %c0_15 = arith.constant 0 : index
      %16 = vector.load %arg6[%c0_14, %c0_15] : memref<128x64xf32, #tpu.memory_space<vmem>>, vector<128x64xf32>
      tpu.vector_store %arg6[%c0_14, %c0_15], %15 {strides = array<i32>} : memref<128x64xf32, #tpu.memory_space<vmem>>, vector<128x64xf32>,
    } else {
    }
    return
  }
  func.func @transform_0(%arg0: i32, %arg1: i32, %arg2: i32) -> (i32, i32) {
    %c0_i32 = arith.constant 0 : i32
    return %arg0, %arg2 : i32, i32
  }
  func.func @transform_1(%arg0: i32, %arg1: i32, %arg2: i32) -> (i32, i32) {
    %c0_i32 = arith.constant 0 : i32
    return %arg1, %arg2 : i32, i32
  }
  func.func @transform_2(%arg0: i32, %arg1: i32, %arg2: i32) -> (i32, i32) {
    %c0_i32 = arith.constant 0 : i32
    %c0_i32_0 = arith.constant 0 : i32
    return %c0_i32, %arg1 : i32, i32
  }
  func.func @transform_3(%arg0: i32, %arg1: i32, %arg2: i32) -> (i32, i32) {
    %c0_i32 = arith.constant 0 : i32
    return %arg0, %arg1 : i32, i32
  }
}

module attributes {stable_mosaic.version = 11 : i64} {
  func.func @_linear_kernel(%arg0: i32, %arg1: i32, %arg2: i32, %arg3: memref<128x32xf32, #tpu.memory_space<vmem>>, %arg4: memref<64x32xf32, #tpu.memory_space<vmem>>, %arg5: memref<1x64xf32, #tpu.memory_space<vmem>>, %arg6: memref<128x64xf32, #tpu.memory_space<vmem>>, %arg7: memref<128x64xf32, #tpu.memory_space<vmem>>) attributes {dimension_semantics = [#tpu.dimension_semantics<parallel>, #tpu.dimension_semantics<parallel>, #tpu.dimension_semantics<arbitrary>], iteration_bounds = array<i64: 1, 1, 1>, scalar_prefetch = 0 : i64, scratch_operands = 1 : i64, tpu.core_type = #tpu.core_type<tc>, window_params = [{transform_indices = @transform_0, window_bounds = array<i64: 128, 32>}, {transform_indices = @transform_1, window_bounds = array<i64: 64, 32>}, {transform_indices = @transform_2, window_bounds = array<i64: 1, 64>}, {transform_indices = @transform_3, window_bounds = array<i64: 128, 64>}]} {
    %c0_i32 = arith.constant 0 : i32
    %0 = arith.cmpi eq, %arg2, %c0_i32 : i32
    %1 = arith.extui %0 : i1 to i32
    %c0_i32_0 = arith.constant 0 : i32
    %2 = arith.cmpi ne, %1, %c0_i32_0 : i32
    scf.if %2 {
      %cst_10 = arith.constant 0.000000e+00 : f32
      %12 = vector.broadcast %cst_10 : f32 to vector<128x64xf32>
      %c0_11 = arith.constant 0 : index
      %c0_12 = arith.constant 0 : index
      %13 = vector.load %arg7[%c0_11, %c0_12] : memref<128x64xf32, #tpu.memory_space<vmem>>, vector<128x64xf32>
      tpu.vector_store %arg7[%c0_11, %c0_12], %12 {strides = array<i32>} : memref<128x64xf32, #tpu.memory_space<vmem>>, vector<128x64xf32>,
    } else {
    }
    %c0 = arith.constant 0 : index
    %c0_1 = arith.constant 0 : index
    %3 = vector.load %arg7[%c0, %c0_1] : memref<128x64xf32, #tpu.memory_space<vmem>>, vector<128x64xf32>
    %c0_2 = arith.constant 0 : index
    %c0_3 = arith.constant 0 : index
    %4 = vector.load %arg3[%c0_2, %c0_3] : memref<128x32xf32, #tpu.memory_space<vmem>>, vector<128x32xf32>
    %c0_4 = arith.constant 0 : index
    %c0_5 = arith.constant 0 : index
    %5 = vector.load %arg4[%c0_4, %c0_5] : memref<64x32xf32, #tpu.memory_space<vmem>>, vector<64x32xf32>
    %cst = arith.constant dense<0.000000e+00> : vector<128x64xf32>
    %6 = tpu.matmul %4, %5, %cst {dimension_numbers = #tpu.dot_dimension_numbers<[1], [1], [0], [0], [0, 0, 1, 0], [], []>} : vector<128x32xf32>, vector<64x32xf32>, vector<128x64xf32> -> vector<128x64xf32>
    %7 = arith.addf %3, %6 : vector<128x64xf32>
    %c0_6 = arith.constant 0 : index
    %c0_7 = arith.constant 0 : index
    %8 = vector.load %arg7[%c0_6, %c0_7] : memref<128x64xf32, #tpu.memory_space<vmem>>, vector<128x64xf32>
    tpu.vector_store %arg7[%c0_6, %c0_7], %7 {strides = array<i32>} : memref<128x64xf32, #tpu.memory_space<vmem>>, vector<128x64xf32>,
    %c0_i32_8 = arith.constant 0 : i32
    %9 = arith.cmpi eq, %arg2, %c0_i32_8 : i32
    %10 = arith.extui %9 : i1 to i32
    %c0_i32_9 = arith.constant 0 : i32
    %11 = arith.cmpi ne, %10, %c0_i32_9 : i32
    scf.if %11 {
      %c0_10 = arith.constant 0 : index
      %c0_11 = arith.constant 0 : index
      %12 = vector.load %arg7[%c0_10, %c0_11] : memref<128x64xf32, #tpu.memory_space<vmem>>, vector<128x64xf32>
      %c0_12 = arith.constant 0 : index
      %c0_13 = arith.constant 0 : index
      %13 = vector.load %arg5[%c0_12, %c0_13] : memref<1x64xf32, #tpu.memory_space<vmem>>, vector<1x64xf32>
      %14 = vector.broadcast %13 : vector<1x64xf32> to vector<128x64xf32>
      %15 = arith.addf %12, %14 : vector<128x64xf32>
      %c0_14 = arith.constant 0 : index
      %c0_15 = arith.constant 0 : index
      %16 = vector.load %arg6[%c0_14, %c0_15] : memref<128x64xf32, #tpu.memory_space<vmem>>, vector<128x64xf32>
      tpu.vector_store %arg6[%c0_14, %c0_15], %15 {strides = array<i32>} : memref<128x64xf32, #tpu.memory_space<vmem>>, vector<128x64xf32>,
    } else {
    }
    return
  }
  func.func @transform_0(%arg0: i32, %arg1: i32, %arg2: i32) -> (i32, i32) {
    %c0_i32 = arith.constant 0 : i32
    return %arg0, %arg2 : i32, i32
  }
  func.func @transform_1(%arg0: i32, %arg1: i32, %arg2: i32) -> (i32, i32) {
    %c0_i32 = arith.constant 0 : i32
    return %arg1, %arg2 : i32, i32
  }
  func.func @transform_2(%arg0: i32, %arg1: i32, %arg2: i32) -> (i32, i32) {
    %c0_i32 = arith.constant 0 : i32
    %c0_i32_0 = arith.constant 0 : i32
    return %c0_i32, %arg1 : i32, i32
  }
  func.func @transform_3(%arg0: i32, %arg1: i32, %arg2: i32) -> (i32, i32) {
    %c0_i32 = arith.constant 0 : i32
    return %arg0, %arg1 : i32, i32
  }
}

</mosaic_0001>

<bundles_post_ra>
// kernel: tpu_custom_call.1
= control target key start
LH: loop header
LB: loop body
LE: loop exit
PB: predicated region body
PF: predicated region fallthrough
CT: control target
= control target key end

     0   :  { %vm75_vm0 = vcmask 261120   ;;  %vm18_vm1 = vcmask 523264   ;;  %v510_v3 = vmov 0.0   ;;  %s774_s1 = inlined_call_operand.vmem [shape: f32[64,32], index: 1, kind: input, shape index: {}]   ;;  %s775_s0 = inlined_call_operand.vmem [shape: f32[128,32], index: 0, kind: input, shape index: {}]   ;;  %s776_s2 = inlined_call_operand.vmem [shape: f32[1,64], index: 2, kind: input, shape index: {}]   ;;  %s777_s3 = inlined_call_operand.vmem [shape: f32[128,64], index: 3, kind: output, shape index: {}]  }
   0x1   :  { %v67_v0 = vld [vmem:[%s774_s1] sm:$0xff]  ;;  %v68_v1 = vld [vmem:[%s774_s1 + $0x8] sm:$0xff]  ;;  %vm539_vm2 = vmpackc.low %vm75_vm0, %vm75_vm0  ;;  %20 = vst.msk [vmem:[#allocation2 + $0x8] sm:$0xff] %vm18_vm1, %v510_v3 }
   0x2   :  { %19 = vst.msk [vmem:[#allocation2] sm:$0xff] %vm18_vm1, %v510_v3  ;;  %21 = vst.msk [vmem:[#allocation2 + $0x10] sm:$0xff] %vm18_vm1, %v510_v3  ;;  %v477_v4 = vpack.c.bf16 %v68_v1, %v67_v0  ;;  %v69_v5 = vld [vmem:[%s774_s1 + $0x10] sm:$0xff]  ;;  %v70_v6 = vld [vmem:[%s774_s1 + $0x18] sm:$0xff] }
   0x3   :  { %22 = vst.msk [vmem:[#allocation2 + $0x18] sm:$0xff] %vm18_vm1, %v510_v3  ;;  %23 = vst.msk [vmem:[#allocation2 + $0x20] sm:$0xff] %vm18_vm1, %v510_v3  ;;  %v483_v7 = vpack.c.bf16 %v70_v6, %v69_v5  ;;  %v51_v8 = vld [vmem:[%s775_s0] sm:$0xff]  ;;  %v72_v11 = vld [vmem:[%s774_s1 + $0x28] sm:$0xff] }
   0x4   :  { %24 = vst.msk [vmem:[#allocation2 + $0x28] sm:$0xff] %vm18_vm1, %v510_v3  ;;  %25 = vst.msk [vmem:[#allocation2 + $0x30] sm:$0xff] %vm18_vm1, %v510_v3  ;;  %479 = vmatprep.subr.msk.bf16.mxu0 %vm539_vm2, %v477_v4  ;;  %501 = vmatprep.subr.msk.bf16.mxu1 %vm539_vm2, %v477_v4  ;;  %v59_v9 = vld [vmem:[%s775_s0 + $0x40] sm:$0xff]  ;;  %v73_v13 = vld [vmem:[%s774_s1 + $0x30] sm:$0xff] }
   0x5   :  { %26 = vst.msk [vmem:[#allocation2 + $0x38] sm:$0xff] %vm18_vm1, %v510_v3  ;;  %27 = vst.msk [vmem:[#allocation2 + $0x40] sm:$0xff] %vm18_vm1, %v510_v3  ;;  %482 = vmatpush3.bf16.xpose.msk.msra.mxu0 %vm539_vm2, %v477_v4  ;;  %505 = vmatpush3.bf16.xpose.msk.msra.mxu1 %vm539_vm2, %v477_v4  ;;  %v71_v10 = vld [vmem:[%s774_s1 + $0x20] sm:$0xff]  ;;  %v74_v14 = vld [vmem:[%s774_s1 + $0x38] sm:$0xff] }
   0x6   :  { %28 = vst.msk [vmem:[#allocation2 + $0x48] sm:$0xff] %vm18_vm1, %v510_v3  ;;  %29 = vst.msk [vmem:[#allocation2 + $0x50] sm:$0xff] %vm18_vm1, %v510_v3  ;;  %485 = vmatprep.subr.msk.bf16.mxu0 %vm539_vm2, %v483_v7  ;;  %502 = vmatprep.subr.msk.bf16.mxu1 %vm539_vm2, %v483_v7  ;;  %v489_v12 = vpack.c.bf16 %v72_v11, %v71_v10  ;;  %v495_v15 = vpack.c.bf16 %v74_v14, %v73_v13  ;;  %v52_v16 = vld [vmem:[%s775_s0 + $0x8] sm:$0xff]  ;;  %v53_v18 = vld [vmem:[%s775_s0 + $0x10] sm:$0xff] }
   0x7   :  { %30 = vst.msk [vmem:[#allocation2 + $0x58] sm:$0xff] %vm18_vm1, %v510_v3  ;;  %31 = vst.msk [vmem:[#allocation2 + $0x60] sm:$0xff] %vm18_vm1, %v510_v3  ;;  %453 = vmatprep.mubr.msk.f32.mxu0 %vm75_vm0, %v51_v8  ;;  %465 = vmatprep.mubr.msk.f32.mxu1 %vm75_vm0, %v59_v9  ;;  %v60_v17 = vld [vmem:[%s775_s0 + $0x48] sm:$0xff]  ;;  %v61_v19 = vld [vmem:[%s775_s0 + $0x50] sm:$0xff] }
   0x8   :  { %32 = vst.msk [vmem:[#allocation2 + $0x68] sm:$0xff] %vm18_vm1, %v510_v3  ;;  %33 = vst.msk [vmem:[#allocation2 + $0x70] sm:$0xff] %vm18_vm1, %v510_v3  ;;  %v54_v20 = vld [vmem:[%s775_s0 + $0x18] sm:$0xff]  ;;  %v55_v22 = vld [vmem:[%s775_s0 + $0x20] sm:$0xff] }
   0x9   :  { %34 = vst.msk [vmem:[#allocation2 + $0x78] sm:$0xff] %vm18_vm1, %v510_v3  ;;  %v62_v21 = vld [vmem:[%s775_s0 + $0x58] sm:$0xff]  ;;  %v63_v23 = vld [vmem:[%s775_s0 + $0x60] sm:$0xff]  ;;  %v56_v24 = vld [vmem:[%s775_s0 + $0x28] sm:$0xff] }
   0xa   :  { %v64_v25 = vld [vmem:[%s775_s0 + $0x68] sm:$0xff]  ;;  %v57_v26 = vld [vmem:[%s775_s0 + $0x30] sm:$0xff]  ;;  %v58_v28 = vld [vmem:[%s775_s0 + $0x38] sm:$0xff] }
   0xb   :  { %v65_v27 = vld [vmem:[%s775_s0 + $0x70] sm:$0xff]  ;;  %v66_v29 = vld [vmem:[%s775_s0 + $0x78] sm:$0xff]  ;;  %v36_v30 = vld [vmem:[#allocation2 + $0x8] sm:$0xff] }
   0xc   :  { %v35_v32 = vld [vmem:[#allocation2] sm:$0xff]  ;;  %v38_v42 = vld [vmem:[#allocation2 + $0x18] sm:$0xff]  ;;  %v37_v44 = vld [vmem:[#allocation2 + $0x10] sm:$0xff] }
   0xd   :  { %488 = vmatpush3.bf16.xpose.msk.msra.mxu0 %vm539_vm2, %v483_v7  ;;  %506 = vmatpush3.bf16.xpose.msk.msra.mxu1 %vm539_vm2, %v483_v7  ;;  %v44_v31 = vld [vmem:[#allocation2 + $0x48] sm:$0xff]  ;;  %v43_v33 = vld [vmem:[#allocation2 + $0x40] sm:$0xff]  ;;  %v45_v45 = vld [vmem:[#allocation2 + $0x50] sm:$0xff] }
   0xe   :  { %491 = vmatprep.subr.msk.bf16.mxu0 %vm539_vm2, %v489_v12  ;;  %503 = vmatprep.subr.msk.bf16.mxu1 %vm539_vm2, %v489_v12  ;;  %v46_v43 = vld [vmem:[#allocation2 + $0x58] sm:$0xff]  ;;  %v40_v54 = vld [vmem:[#allocation2 + $0x28] sm:$0xff]  ;;  %v39_v56 = vld [vmem:[#allocation2 + $0x20] sm:$0xff] }
   0xf   :  { %v48_v55 = vld [vmem:[#allocation2 + $0x68] sm:$0xff]  ;;  %v47_v57 = vld [vmem:[#allocation2 + $0x60] sm:$0xff]  ;;  %v42_v1 = vld [vmem:[#allocation2 + $0x38] sm:$0xff] }
  0x10   :  { %v682_v58 = vld [vmem:[%s776_s2] ss:$0 sm:$0xff]  ;;  %v50_v2 = vld [vmem:[#allocation2 + $0x78] sm:$0xff]  ;;  %v41_v7 = vld [vmem:[#allocation2 + $0x30] sm:$0xff] }
  0x15   :  { %494 = vmatpush3.bf16.xpose.msk.msra.mxu0 %vm539_vm2, %v489_v12  ;;  %507 = vmatpush3.bf16.xpose.msk.msra.mxu1 %vm539_vm2, %v489_v12  ;;  %v49_v12 = vld [vmem:[#allocation2 + $0x70] sm:$0xff] }
  0x16   :  { %497 = vmatprep.subr.msk.bf16.mxu0 %vm539_vm2, %v495_v15  ;;  %504 = vmatprep.subr.msk.bf16.mxu1 %vm539_vm2, %v495_v15 }
  0x1d   :  { %500 = vmatpush3.bf16.xpose.msk.msra.mxu0 %vm539_vm2, %v495_v15  ;;  %508 = vmatpush3.bf16.xpose.msk.msra.mxu1 %vm539_vm2, %v495_v15 }
  0x24   :  { %454 = vmatmul.mubr.msk.f32.vlgmr.msra.gmra.mrb[0].mxu0 %vm75_vm0, %v52_v16  ;;  %466 = vmatmul.mubr.msk.f32.vlgmr.msra.gmra.mrb[0].mxu1 %vm75_vm0, %v60_v17 }
  0x25   :  { %456 = vmatprep.mubr.msk.f32.mxu0 %vm75_vm0, %v53_v18  ;;  %468 = vmatprep.mubr.msk.f32.mxu1 %vm75_vm0, %v61_v19 }
  0x28   :  { %457 = vmatmul.mubr.msk.f32.gmra.mrb[2].mxu0 %vm75_vm0, %v54_v20  ;;  %469 = vmatmul.mubr.msk.f32.gmra.mrb[2].mxu1 %vm75_vm0, %v62_v21 }
  0x29   :  { %459 = vmatprep.mubr.msk.f32.mxu0 %vm75_vm0, %v55_v22  ;;  %471 = vmatprep.mubr.msk.f32.mxu1 %vm75_vm0, %v63_v23 }
  0x2c   :  { %460 = vmatmul.mubr.msk.f32.gmra.mrb[4].mxu0 %vm75_vm0, %v56_v24  ;;  %472 = vmatmul.mubr.msk.f32.gmra.mrb[4].mxu1 %vm75_vm0, %v64_v25 }
  0x2d   :  { %462 = vmatprep.mubr.msk.f32.mxu0 %vm75_vm0, %v57_v26  ;;  %474 = vmatprep.mubr.msk.f32.mxu1 %vm75_vm0, %v65_v27 }
  0x30   :  { %463 = vmatmul.mubr.msk.f32.gmra.mrb[6].mxu0 %vm75_vm0, %v58_v28  ;;  %475 = vmatmul.mubr.msk.f32.gmra.mrb[6].mxu1 %vm75_vm0, %v66_v29 }
  0xf7   :  { %v455_v34 = vpop.f32.mrb[0].mxu0  ;;  %v467_v35 = vpop.f32.mrb[0].mxu1 }
  0xf8   :  { %v294_v36 = vadd.f32 %v455_v34, %v36_v30  ;;  %v302_v37 = vadd.f32 %v467_v35, %v44_v31  ;;  %v214_v38 = vpop.f32.mrb[1].mxu0  ;;  %v254_v39 = vpop.f32.mrb[1].mxu1 }
  0xf9   :  { %v293_v40 = vadd.f32 %v214_v38, %v35_v32  ;;  %v301_v41 = vadd.f32 %v254_v39, %v43_v33 }
  0xfa   :  { %311 = vst.msk [vmem:[#allocation2 + $0x8] sm:$0xff] %vm18_vm1, %v294_v36  ;;  %319 = vst.msk [vmem:[#allocation2 + $0x48] sm:$0xff] %vm18_vm1, %v302_v37 }
  0xfb   :  { %310 = vst.msk [vmem:[#allocation2] sm:$0xff] %vm18_vm1, %v293_v40  ;;  %318 = vst.msk [vmem:[#allocation2 + $0x40] sm:$0xff] %vm18_vm1, %v301_v41  ;;  %v458_v46 = vpop.f32.mrb[2].mxu0  ;;  %v470_v47 = vpop.f32.mrb[2].mxu1 }
  0xfc   :  { %v296_v48 = vadd.f32 %v458_v46, %v38_v42  ;;  %v304_v49 = vadd.f32 %v470_v47, %v46_v43  ;;  %v224_v50 = vpop.f32.mrb[3].mxu0  ;;  %v264_v51 = vpop.f32.mrb[3].mxu1 }
  0xfd   :  { %v295_v52 = vadd.f32 %v224_v50, %v37_v44  ;;  %v303_v53 = vadd.f32 %v264_v51, %v45_v45 }
  0xfe   :  { %313 = vst.msk [vmem:[#allocation2 + $0x18] sm:$0xff] %vm18_vm1, %v296_v48  ;;  %321 = vst.msk [vmem:[#allocation2 + $0x58] sm:$0xff] %vm18_vm1, %v304_v49 }
  0xff   :  { %312 = vst.msk [vmem:[#allocation2 + $0x10] sm:$0xff] %vm18_vm1, %v295_v52  ;;  %320 = vst.msk [vmem:[#allocation2 + $0x50] sm:$0xff] %vm18_vm1, %v303_v53  ;;  %v461_v59 = vpop.f32.mrb[4].mxu0  ;;  %v473_v60 = vpop.f32.mrb[4].mxu1 }
 0x100   :  { %v298_v61 = vadd.f32 %v461_v59, %v40_v54  ;;  %v306_v62 = vadd.f32 %v473_v60, %v48_v55  ;;  %v234_v63 = vpop.f32.mrb[5].mxu0  ;;  %v274_v0 = vpop.f32.mrb[5].mxu1 }
 0x101   :  { %v330_v3 = vld [vmem:[#allocation2 + $0x8] sm:$0xff]  ;;  %v297_v5 = vadd.f32 %v234_v63, %v39_v56  ;;  %v305_v6 = vadd.f32 %v274_v0, %v47_v57 }
 0x102   :  { %v338_v4 = vld [vmem:[#allocation2 + $0x48] sm:$0xff]  ;;  %v353_v8 = vadd.f32 %v682_v58, %v330_v3  ;;  %v329_v10 = vld [vmem:[#allocation2] sm:$0xff]  ;;  %315 = vst.msk [vmem:[#allocation2 + $0x28] sm:$0xff] %vm18_vm1, %v298_v61  ;;  %323 = vst.msk [vmem:[#allocation2 + $0x68] sm:$0xff] %vm18_vm1, %v306_v62 }
 0x103   :  { %v361_v9 = vadd.f32 %v682_v58, %v338_v4  ;;  %v337_v11 = vld [vmem:[#allocation2 + $0x40] sm:$0xff]  ;;  %v352_v13 = vadd.f32 %v682_v58, %v329_v10  ;;  %314 = vst.msk [vmem:[#allocation2 + $0x20] sm:$0xff] %vm18_vm1, %v297_v5  ;;  %322 = vst.msk [vmem:[#allocation2 + $0x60] sm:$0xff] %vm18_vm1, %v305_v6  ;;  %v464_v15 = vpop.f32.mrb[6].mxu0  ;;  %v476_v16 = vpop.f32.mrb[6].mxu1 }
 0x104   :  { %v360_v14 = vadd.f32 %v682_v58, %v337_v11  ;;  %369 = vst.msk [vmem:[%s777_s3 + $0x8] sm:$0xff] %vm18_vm1, %v353_v8  ;;  %v300_v17 = vadd.f32 %v464_v15, %v42_v1  ;;  %v308_v18 = vadd.f32 %v476_v16, %v50_v2  ;;  %v244_v19 = vpop.f32.mrb[7].mxu0  ;;  %v284_v20 = vpop.f32.mrb[7].mxu1 }
 0x105   :  { %377 = vst.msk [vmem:[%s777_s3 + $0x48] sm:$0xff] %vm18_vm1, %v361_v9  ;;  %368 = vst.msk [vmem:[%s777_s3] sm:$0xff] %vm18_vm1, %v352_v13  ;;  %v332_v21 = vld [vmem:[#allocation2 + $0x18] sm:$0xff]  ;;  %v299_v23 = vadd.f32 %v244_v19, %v41_v7  ;;  %v307_v24 = vadd.f32 %v284_v20, %v49_v12 }
 0x106   :  { %376 = vst.msk [vmem:[%s777_s3 + $0x40] sm:$0xff] %vm18_vm1, %v360_v14  ;;  %v340_v22 = vld [vmem:[#allocation2 + $0x58] sm:$0xff]  ;;  %v355_v25 = vadd.f32 %v682_v58, %v332_v21  ;;  %v331_v27 = vld [vmem:[#allocation2 + $0x10] sm:$0xff]  ;;  %317 = vst.msk [vmem:[#allocation2 + $0x38] sm:$0xff] %vm18_vm1, %v300_v17 }
 0x107   :  { %v363_v26 = vadd.f32 %v682_v58, %v340_v22  ;;  %v339_v28 = vld [vmem:[#allocation2 + $0x50] sm:$0xff]  ;;  %325 = vst.msk [vmem:[#allocation2 + $0x78] sm:$0xff] %vm18_vm1, %v308_v18  ;;  %v354_v29 = vadd.f32 %v682_v58, %v331_v27  ;;  %316 = vst.msk [vmem:[#allocation2 + $0x30] sm:$0xff] %vm18_vm1, %v299_v23 }
 0x108   :  { %v362_v30 = vadd.f32 %v682_v58, %v339_v28  ;;  %324 = vst.msk [vmem:[#allocation2 + $0x70] sm:$0xff] %vm18_vm1, %v307_v24  ;;  %371 = vst.msk [vmem:[%s777_s3 + $0x18] sm:$0xff] %vm18_vm1, %v355_v25 }
 0x109   :  { %379 = vst.msk [vmem:[%s777_s3 + $0x58] sm:$0xff] %vm18_vm1, %v363_v26  ;;  %370 = vst.msk [vmem:[%s777_s3 + $0x10] sm:$0xff] %vm18_vm1, %v354_v29  ;;  %v334_v31 = vld [vmem:[#allocation2 + $0x28] sm:$0xff] }
 0x10a   :  { %378 = vst.msk [vmem:[%s777_s3 + $0x50] sm:$0xff] %vm18_vm1, %v362_v30  ;;  %v342_v32 = vld [vmem:[#allocation2 + $0x68] sm:$0xff]  ;;  %v357_v33 = vadd.f32 %v682_v58, %v334_v31  ;;  %v333_v35 = vld [vmem:[#allocation2 + $0x20] sm:$0xff] }
 0x10b   :  { %v365_v34 = vadd.f32 %v682_v58, %v342_v32  ;;  %v341_v36 = vld [vmem:[#allocation2 + $0x60] sm:$0xff]  ;;  %v356_v37 = vadd.f32 %v682_v58, %v333_v35 }
 0x10c   :  { %v364_v38 = vadd.f32 %v682_v58, %v341_v36  ;;  %373 = vst.msk [vmem:[%s777_s3 + $0x28] sm:$0xff] %vm18_vm1, %v357_v33 }
 0x10d   :  { %381 = vst.msk [vmem:[%s777_s3 + $0x68] sm:$0xff] %vm18_vm1, %v365_v34  ;;  %372 = vst.msk [vmem:[%s777_s3 + $0x20] sm:$0xff] %vm18_vm1, %v356_v37  ;;  %v336_v39 = vld [vmem:[#allocation2 + $0x38] sm:$0xff] }
 0x10e   :  { %380 = vst.msk [vmem:[%s777_s3 + $0x60] sm:$0xff] %vm18_vm1, %v364_v38  ;;  %v344_v40 = vld [vmem:[#allocation2 + $0x78] sm:$0xff]  ;;  %v359_v41 = vadd.f32 %v682_v58, %v336_v39  ;;  %v335_v43 = vld [vmem:[#allocation2 + $0x30] sm:$0xff] }
 0x10f   :  { %v367_v42 = vadd.f32 %v682_v58, %v344_v40  ;;  %v343_v44 = vld [vmem:[#allocation2 + $0x70] sm:$0xff]  ;;  %v358_v45 = vadd.f32 %v682_v58, %v335_v43 }
 0x110   :  { %v366_v46 = vadd.f32 %v682_v58, %v343_v44  ;;  %375 = vst.msk [vmem:[%s777_s3 + $0x38] sm:$0xff] %vm18_vm1, %v359_v41 }
 0x111   :  { %383 = vst.msk [vmem:[%s777_s3 + $0x78] sm:$0xff] %vm18_vm1, %v367_v42  ;;  %374 = vst.msk [vmem:[%s777_s3 + $0x30] sm:$0xff] %vm18_vm1, %v358_v45 }
 0x112   :  { %382 = vst.msk [vmem:[%s777_s3 + $0x70] sm:$0xff] %vm18_vm1, %v366_v46 }

// kernel: tpu_custom_call.1
= control target key start
LH: loop header
LB: loop body
LE: loop exit
PB: predicated region body
PF: predicated region fallthrough
CT: control target
= control target key end

     0   :  { %vm75_vm0 = vcmask 261120   ;;  %vm18_vm1 = vcmask 523264   ;;  %v510_v3 = vmov 0.0   ;;  %s774_s1 = inlined_call_operand.vmem [shape: f32[64,32], index: 1, kind: input, shape index: {}]   ;;  %s775_s0 = inlined_call_operand.vmem [shape: f32[128,32], index: 0, kind: input, shape index: {}]   ;;  %s776_s2 = inlined_call_operand.vmem [shape: f32[1,64], index: 2, kind: input, shape index: {}]   ;;  %s777_s3 = inlined_call_operand.vmem [shape: f32[128,64], index: 3, kind: output, shape index: {}]  }
   0x1   :  { %v67_v0 = vld [vmem:[%s774_s1] sm:$0xff]  ;;  %v68_v1 = vld [vmem:[%s774_s1 + $0x8] sm:$0xff]  ;;  %vm539_vm2 = vmpackc.low %vm75_vm0, %vm75_vm0  ;;  %20 = vst.msk [vmem:[#allocation2 + $0x8] sm:$0xff] %vm18_vm1, %v510_v3 }
   0x2   :  { %19 = vst.msk [vmem:[#allocation2] sm:$0xff] %vm18_vm1, %v510_v3  ;;  %21 = vst.msk [vmem:[#allocation2 + $0x10] sm:$0xff] %vm18_vm1, %v510_v3  ;;  %v477_v4 = vpack.c.bf16 %v68_v1, %v67_v0  ;;  %v69_v5 = vld [vmem:[%s774_s1 + $0x10] sm:$0xff]  ;;  %v70_v6 = vld [vmem:[%s774_s1 + $0x18] sm:$0xff] }
   0x3   :  { %22 = vst.msk [vmem:[#allocation2 + $0x18] sm:$0xff] %vm18_vm1, %v510_v3  ;;  %23 = vst.msk [vmem:[#allocation2 + $0x20] sm:$0xff] %vm18_vm1, %v510_v3  ;;  %v483_v7 = vpack.c.bf16 %v70_v6, %v69_v5  ;;  %v51_v8 = vld [vmem:[%s775_s0] sm:$0xff]  ;;  %v72_v11 = vld [vmem:[%s774_s1 + $0x28] sm:$0xff] }
   0x4   :  { %24 = vst.msk [vmem:[#allocation2 + $0x28] sm:$0xff] %vm18_vm1, %v510_v3  ;;  %25 = vst.msk [vmem:[#allocation2 + $0x30] sm:$0xff] %vm18_vm1, %v510_v3  ;;  %479 = vmatprep.subr.msk.bf16.mxu0 %vm539_vm2, %v477_v4  ;;  %501 = vmatprep.subr.msk.bf16.mxu1 %vm539_vm2, %v477_v4  ;;  %v59_v9 = vld [vmem:[%s775_s0 + $0x40] sm:$0xff]  ;;  %v73_v13 = vld [vmem:[%s774_s1 + $0x30] sm:$0xff] }
   0x5   :  { %26 = vst.msk [vmem:[#allocation2 + $0x38] sm:$0xff] %vm18_vm1, %v510_v3  ;;  %27 = vst.msk [vmem:[#allocation2 + $0x40] sm:$0xff] %vm18_vm1, %v510_v3  ;;  %482 = vmatpush3.bf16.xpose.msk.msra.mxu0 %vm539_vm2, %v477_v4  ;;  %505 = vmatpush3.bf16.xpose.msk.msra.mxu1 %vm539_vm2, %v477_v4  ;;  %v71_v10 = vld [vmem:[%s774_s1 + $0x20] sm:$0xff]  ;;  %v74_v14 = vld [vmem:[%s774_s1 + $0x38] sm:$0xff] }
   0x6   :  { %28 = vst.msk [vmem:[#allocation2 + $0x48] sm:$0xff] %vm18_vm1, %v510_v3  ;;  %29 = vst.msk [vmem:[#allocation2 + $0x50] sm:$0xff] %vm18_vm1, %v510_v3  ;;  %485 = vmatprep.subr.msk.bf16.mxu0 %vm539_vm2, %v483_v7  ;;  %502 = vmatprep.subr.msk.bf16.mxu1 %vm539_vm2, %v483_v7  ;;  %v489_v12 = vpack.c.bf16 %v72_v11, %v71_v10  ;;  %v495_v15 = vpack.c.bf16 %v74_v14, %v73_v13  ;;  %v52_v16 = vld [vmem:[%s775_s0 + $0x8] sm:$0xff]  ;;  %v53_v18 = vld [vmem:[%s775_s0 + $0x10] sm:$0xff] }
   0x7   :  { %30 = vst.msk [vmem:[#allocation2 + $0x58] sm:$0xff] %vm18_vm1, %v510_v3  ;;  %31 = vst.msk [vmem:[#allocation2 + $0x60] sm:$0xff] %vm18_vm1, %v510_v3  ;;  %453 = vmatprep.mubr.msk.f32.mxu0 %vm75_vm0, %v51_v8  ;;  %465 = vmatprep.mubr.msk.f32.mxu1 %vm75_vm0, %v59_v9  ;;  %v60_v17 = vld [vmem:[%s775_s0 + $0x48] sm:$0xff]  ;;  %v61_v19 = vld [vmem:[%s775_s0 + $0x50] sm:$0xff] }
   0x8   :  { %32 = vst.msk [vmem:[#allocation2 + $0x68] sm:$0xff] %vm18_vm1, %v510_v3  ;;  %33 = vst.msk [vmem:[#allocation2 + $0x70] sm:$0xff] %vm18_vm1, %v510_v3  ;;  %v54_v20 = vld [vmem:[%s775_s0 + $0x18] sm:$0xff]  ;;  %v55_v22 = vld [vmem:[%s775_s0 + $0x20] sm:$0xff] }
   0x9   :  { %34 = vst.msk [vmem:[#allocation2 + $0x78] sm:$0xff] %vm18_vm1, %v510_v3  ;;  %v62_v21 = vld [vmem:[%s775_s0 + $0x58] sm:$0xff]  ;;  %v63_v23 = vld [vmem:[%s775_s0 + $0x60] sm:$0xff]  ;;  %v56_v24 = vld [vmem:[%s775_s0 + $0x28] sm:$0xff] }
   0xa   :  { %v64_v25 = vld [vmem:[%s775_s0 + $0x68] sm:$0xff]  ;;  %v57_v26 = vld [vmem:[%s775_s0 + $0x30] sm:$0xff]  ;;  %v58_v28 = vld [vmem:[%s775_s0 + $0x38] sm:$0xff] }
   0xb   :  { %v65_v27 = vld [vmem:[%s775_s0 + $0x70] sm:$0xff]  ;;  %v66_v29 = vld [vmem:[%s775_s0 + $0x78] sm:$0xff]  ;;  %v36_v30 = vld [vmem:[#allocation2 + $0x8] sm:$0xff] }
   0xc   :  { %v35_v32 = vld [vmem:[#allocation2] sm:$0xff]  ;;  %v38_v42 = vld [vmem:[#allocation2 + $0x18] sm:$0xff]  ;;  %v37_v44 = vld [vmem:[#allocation2 + $0x10] sm:$0xff] }
   0xd   :  { %488 = vmatpush3.bf16.xpose.msk.msra.mxu0 %vm539_vm2, %v483_v7  ;;  %506 = vmatpush3.bf16.xpose.msk.msra.mxu1 %vm539_vm2, %v483_v7  ;;  %v44_v31 = vld [vmem:[#allocation2 + $0x48] sm:$0xff]  ;;  %v43_v33 = vld [vmem:[#allocation2 + $0x40] sm:$0xff]  ;;  %v45_v45 = vld [vmem:[#allocation2 + $0x50] sm:$0xff] }
   0xe   :  { %491 = vmatprep.subr.msk.bf16.mxu0 %vm539_vm2, %v489_v12  ;;  %503 = vmatprep.subr.msk.bf16.mxu1 %vm539_vm2, %v489_v12  ;;  %v46_v43 = vld [vmem:[#allocation2 + $0x58] sm:$0xff]  ;;  %v40_v54 = vld [vmem:[#allocation2 + $0x28] sm:$0xff]  ;;  %v39_v56 = vld [vmem:[#allocation2 + $0x20] sm:$0xff] }
   0xf   :  { %v48_v55 = vld [vmem:[#allocation2 + $0x68] sm:$0xff]  ;;  %v47_v57 = vld [vmem:[#allocation2 + $0x60] sm:$0xff]  ;;  %v42_v1 = vld [vmem:[#allocation2 + $0x38] sm:$0xff] }
  0x10   :  { %v682_v58 = vld [vmem:[%s776_s2] ss:$0 sm:$0xff]  ;;  %v50_v2 = vld [vmem:[#allocation2 + $0x78] sm:$0xff]  ;;  %v41_v7 = vld [vmem:[#allocation2 + $0x30] sm:$0xff] }
  0x15   :  { %494 = vmatpush3.bf16.xpose.msk.msra.mxu0 %vm539_vm2, %v489_v12  ;;  %507 = vmatpush3.bf16.xpose.msk.msra.mxu1 %vm539_vm2, %v489_v12  ;;  %v49_v12 = vld [vmem:[#allocation2 + $0x70] sm:$0xff] }
  0x16   :  { %497 = vmatprep.subr.msk.bf16.mxu0 %vm539_vm2, %v495_v15  ;;  %504 = vmatprep.subr.msk.bf16.mxu1 %vm539_vm2, %v495_v15 }
  0x1d   :  { %500 = vmatpush3.bf16.xpose.msk.msra.mxu0 %vm539_vm2, %v495_v15  ;;  %508 = vmatpush3.bf16.xpose.msk.msra.mxu1 %vm539_vm2, %v495_v15 }
  0x24   :  { %454 = vmatmul.mubr.msk.f32.vlgmr.msra.gmra.mrb[0].mxu0 %vm75_vm0, %v52_v16  ;;  %466 = vmatmul.mubr.msk.f32.vlgmr.msra.gmra.mrb[0].mxu1 %vm75_vm0, %v60_v17 }
  0x25   :  { %456 = vmatprep.mubr.msk.f32.mxu0 %vm75_vm0, %v53_v18  ;;  %468 = vmatprep.mubr.msk.f32.mxu1 %vm75_vm0, %v61_v19 }
  0x28   :  { %457 = vmatmul.mubr.msk.f32.gmra.mrb[2].mxu0 %vm75_vm0, %v54_v20  ;;  %469 = vmatmul.mubr.msk.f32.gmra.mrb[2].mxu1 %vm75_vm0, %v62_v21 }
  0x29   :  { %459 = vmatprep.mubr.msk.f32.mxu0 %vm75_vm0, %v55_v22  ;;  %471 = vmatprep.mubr.msk.f32.mxu1 %vm75_vm0, %v63_v23 }
  0x2c   :  { %460 = vmatmul.mubr.msk.f32.gmra.mrb[4].mxu0 %vm75_vm0, %v56_v24  ;;  %472 = vmatmul.mubr.msk.f32.gmra.mrb[4].mxu1 %vm75_vm0, %v64_v25 }
  0x2d   :  { %462 = vmatprep.mubr.msk.f32.mxu0 %vm75_vm0, %v57_v26  ;;  %474 = vmatprep.mubr.msk.f32.mxu1 %vm75_vm0, %v65_v27 }
  0x30   :  { %463 = vmatmul.mubr.msk.f32.gmra.mrb[6].mxu0 %vm75_vm0, %v58_v28  ;;  %475 = vmatmul.mubr.msk.f32.gmra.mrb[6].mxu1 %vm75_vm0, %v66_v29 }
  0xf7   :  { %v455_v34 = vpop.f32.mrb[0].mxu0  ;;  %v467_v35 = vpop.f32.mrb[0].mxu1 }
  0xf8   :  { %v294_v36 = vadd.f32 %v455_v34, %v36_v30  ;;  %v302_v37 = vadd.f32 %v467_v35, %v44_v31  ;;  %v214_v38 = vpop.f32.mrb[1].mxu0  ;;  %v254_v39 = vpop.f32.mrb[1].mxu1 }
  0xf9   :  { %v293_v40 = vadd.f32 %v214_v38, %v35_v32  ;;  %v301_v41 = vadd.f32 %v254_v39, %v43_v33 }
  0xfa   :  { %311 = vst.msk [vmem:[#allocation2 + $0x8] sm:$0xff] %vm18_vm1, %v294_v36  ;;  %319 = vst.msk [vmem:[#allocation2 + $0x48] sm:$0xff] %vm18_vm1, %v302_v37 }
  0xfb   :  { %310 = vst.msk [vmem:[#allocation2] sm:$0xff] %vm18_vm1, %v293_v40  ;;  %318 = vst.msk [vmem:[#allocation2 + $0x40] sm:$0xff] %vm18_vm1, %v301_v41  ;;  %v458_v46 = vpop.f32.mrb[2].mxu0  ;;  %v470_v47 = vpop.f32.mrb[2].mxu1 }
  0xfc   :  { %v296_v48 = vadd.f32 %v458_v46, %v38_v42  ;;  %v304_v49 = vadd.f32 %v470_v47, %v46_v43  ;;  %v224_v50 = vpop.f32.mrb[3].mxu0  ;;  %v264_v51 = vpop.f32.mrb[3].mxu1 }
  0xfd   :  { %v295_v52 = vadd.f32 %v224_v50, %v37_v44  ;;  %v303_v53 = vadd.f32 %v264_v51, %v45_v45 }
  0xfe   :  { %313 = vst.msk [vmem:[#allocation2 + $0x18] sm:$0xff] %vm18_vm1, %v296_v48  ;;  %321 = vst.msk [vmem:[#allocation2 + $0x58] sm:$0xff] %vm18_vm1, %v304_v49 }
  0xff   :  { %312 = vst.msk [vmem:[#allocation2 + $0x10] sm:$0xff] %vm18_vm1, %v295_v52  ;;  %320 = vst.msk [vmem:[#allocation2 + $0x50] sm:$0xff] %vm18_vm1, %v303_v53  ;;  %v461_v59 = vpop.f32.mrb[4].mxu0  ;;  %v473_v60 = vpop.f32.mrb[4].mxu1 }
 0x100   :  { %v298_v61 = vadd.f32 %v461_v59, %v40_v54  ;;  %v306_v62 = vadd.f32 %v473_v60, %v48_v55  ;;  %v234_v63 = vpop.f32.mrb[5].mxu0  ;;  %v274_v0 = vpop.f32.mrb[5].mxu1 }
 0x101   :  { %v330_v3 = vld [vmem:[#allocation2 + $0x8] sm:$0xff]  ;;  %v297_v5 = vadd.f32 %v234_v63, %v39_v56  ;;  %v305_v6 = vadd.f32 %v274_v0, %v47_v57 }
 0x102   :  { %v338_v4 = vld [vmem:[#allocation2 + $0x48] sm:$0xff]  ;;  %v353_v8 = vadd.f32 %v682_v58, %v330_v3  ;;  %v329_v10 = vld [vmem:[#allocation2] sm:$0xff]  ;;  %315 = vst.msk [vmem:[#allocation2 + $0x28] sm:$0xff] %vm18_vm1, %v298_v61  ;;  %323 = vst.msk [vmem:[#allocation2 + $0x68] sm:$0xff] %vm18_vm1, %v306_v62 }
 0x103   :  { %v361_v9 = vadd.f32 %v682_v58, %v338_v4  ;;  %v337_v11 = vld [vmem:[#allocation2 + $0x40] sm:$0xff]  ;;  %v352_v13 = vadd.f32 %v682_v58, %v329_v10  ;;  %314 = vst.msk [vmem:[#allocation2 + $0x20] sm:$0xff] %vm18_vm1, %v297_v5  ;;  %322 = vst.msk [vmem:[#allocation2 + $0x60] sm:$0xff] %vm18_vm1, %v305_v6  ;;  %v464_v15 = vpop.f32.mrb[6].mxu0  ;;  %v476_v16 = vpop.f32.mrb[6].mxu1 }
 0x104   :  { %v360_v14 = vadd.f32 %v682_v58, %v337_v11  ;;  %369 = vst.msk [vmem:[%s777_s3 + $0x8] sm:$0xff] %vm18_vm1, %v353_v8  ;;  %v300_v17 = vadd.f32 %v464_v15, %v42_v1  ;;  %v308_v18 = vadd.f32 %v476_v16, %v50_v2  ;;  %v244_v19 = vpop.f32.mrb[7].mxu0  ;;  %v284_v20 = vpop.f32.mrb[7].mxu1 }
 0x105   :  { %377 = vst.msk [vmem:[%s777_s3 + $0x48] sm:$0xff] %vm18_vm1, %v361_v9  ;;  %368 = vst.msk [vmem:[%s777_s3] sm:$0xff] %vm18_vm1, %v352_v13  ;;  %v332_v21 = vld [vmem:[#allocation2 + $0x18] sm:$0xff]  ;;  %v299_v23 = vadd.f32 %v244_v19, %v41_v7  ;;  %v307_v24 = vadd.f32 %v284_v20, %v49_v12 }
 0x106   :  { %376 = vst.msk [vmem:[%s777_s3 + $0x40] sm:$0xff] %vm18_vm1, %v360_v14  ;;  %v340_v22 = vld [vmem:[#allocation2 + $0x58] sm:$0xff]  ;;  %v355_v25 = vadd.f32 %v682_v58, %v332_v21  ;;  %v331_v27 = vld [vmem:[#allocation2 + $0x10] sm:$0xff]  ;;  %317 = vst.msk [vmem:[#allocation2 + $0x38] sm:$0xff] %vm18_vm1, %v300_v17 }
 0x107   :  { %v363_v26 = vadd.f32 %v682_v58, %v340_v22  ;;  %v339_v28 = vld [vmem:[#allocation2 + $0x50] sm:$0xff]  ;;  %325 = vst.msk [vmem:[#allocation2 + $0x78] sm:$0xff] %vm18_vm1, %v308_v18  ;;  %v354_v29 = vadd.f32 %v682_v58, %v331_v27  ;;  %316 = vst.msk [vmem:[#allocation2 + $0x30] sm:$0xff] %vm18_vm1, %v299_v23 }
 0x108   :  { %v362_v30 = vadd.f32 %v682_v58, %v339_v28  ;;  %324 = vst.msk [vmem:[#allocation2 + $0x70] sm:$0xff] %vm18_vm1, %v307_v24  ;;  %371 = vst.msk [vmem:[%s777_s3 + $0x18] sm:$0xff] %vm18_vm1, %v355_v25 }
 0x109   :  { %379 = vst.msk [vmem:[%s777_s3 + $0x58] sm:$0xff] %vm18_vm1, %v363_v26  ;;  %370 = vst.msk [vmem:[%s777_s3 + $0x10] sm:$0xff] %vm18_vm1, %v354_v29  ;;  %v334_v31 = vld [vmem:[#allocation2 + $0x28] sm:$0xff] }
 0x10a   :  { %378 = vst.msk [vmem:[%s777_s3 + $0x50] sm:$0xff] %vm18_vm1, %v362_v30  ;;  %v342_v32 = vld [vmem:[#allocation2 + $0x68] sm:$0xff]  ;;  %v357_v33 = vadd.f32 %v682_v58, %v334_v31  ;;  %v333_v35 = vld [vmem:[#allocation2 + $0x20] sm:$0xff] }
 0x10b   :  { %v365_v34 = vadd.f32 %v682_v58, %v342_v32  ;;  %v341_v36 = vld [vmem:[#allocation2 + $0x60] sm:$0xff]  ;;  %v356_v37 = vadd.f32 %v682_v58, %v333_v35 }
 0x10c   :  { %v364_v38 = vadd.f32 %v682_v58, %v341_v36  ;;  %373 = vst.msk [vmem:[%s777_s3 + $0x28] sm:$0xff] %vm18_vm1, %v357_v33 }
 0x10d   :  { %381 = vst.msk [vmem:[%s777_s3 + $0x68] sm:$0xff] %vm18_vm1, %v365_v34  ;;  %372 = vst.msk [vmem:[%s777_s3 + $0x20] sm:$0xff] %vm18_vm1, %v356_v37  ;;  %v336_v39 = vld [vmem:[#allocation2 + $0x38] sm:$0xff] }
 0x10e   :  { %380 = vst.msk [vmem:[%s777_s3 + $0x60] sm:$0xff] %vm18_vm1, %v364_v38  ;;  %v344_v40 = vld [vmem:[#allocation2 + $0x78] sm:$0xff]  ;;  %v359_v41 = vadd.f32 %v682_v58, %v336_v39  ;;  %v335_v43 = vld [vmem:[#allocation2 + $0x30] sm:$0xff] }
 0x10f   :  { %v367_v42 = vadd.f32 %v682_v58, %v344_v40  ;;  %v343_v44 = vld [vmem:[#allocation2 + $0x70] sm:$0xff]  ;;  %v358_v45 = vadd.f32 %v682_v58, %v335_v43 }
 0x110   :  { %v366_v46 = vadd.f32 %v682_v58, %v343_v44  ;;  %375 = vst.msk [vmem:[%s777_s3 + $0x38] sm:$0xff] %vm18_vm1, %v359_v41 }
 0x111   :  { %383 = vst.msk [vmem:[%s777_s3 + $0x78] sm:$0xff] %vm18_vm1, %v367_v42  ;;  %374 = vst.msk [vmem:[%s777_s3 + $0x30] sm:$0xff] %vm18_vm1, %v358_v45 }
 0x112   :  { %382 = vst.msk [vmem:[%s777_s3 + $0x70] sm:$0xff] %vm18_vm1, %v366_v46 }

</bundles_post_ra>
